<compile_context>
chip_gen: v5e
topology: v5e:2x2
jax: 0.10.0
libtpu: 0.0.40
codegen_flags: <defaults>
</compile_context>

<pallas_src>
import functools

import numpy as np
import jax
import jax.numpy as jnp
from jax.experimental import pallas as pl
from jax.experimental.pallas import tpu as pltpu


def dilated_lstm_seq_kernel(dil_ref, x_ref, hx0_ref, cx0_ref, w_ref, b_ref,
                            y_ref, hx_ref, cx_ref, sum_ref):
    """One grid step == one DilatedLSTM.forward() call.

    dil_ref : SMEM [T] int32   dilation slot per time step (scalar prefetch)
    x_ref   : VMEM [1, B, I]   input at step t
    hx0_ref : VMEM [R, B, H]   initial hidden state (consumed at t == 0)
    cx0_ref : VMEM [R, B, H]   initial cell state   (consumed at t == 0)
    w_ref   : VMEM [I+H, 4H]   fused [W_ih^T ; W_hh^T]   (gate order i, f, g, o)
    b_ref   : VMEM [1, 4H]     b_ih + b_hh
    y_ref   : VMEM [1, B, H]   pooled output at step t
    hx_ref  : VMEM [R, B, H]   resident hidden state (output accumulator)
    cx_ref  : VMEM [R, B, H]   resident cell state   (output accumulator)
    sum_ref : VMEM [B, H]      running sum of hx over the R slots
    """
    t = pl.program_id(0)
    R = hx_ref.shape[0]
    H = hx_ref.shape[2]

    @pl.when(t == 0)
    def _init():
        hx_ref[...] = hx0_ref[...]
        cx_ref[...] = cx0_ref[...]
        sum_ref[...] = jnp.sum(hx0_ref[...], axis=0)

    d = dil_ref[t]                      # current dilation slot (SMEM scalar)
    x = x_ref[0]                        # [B, I]
    h_d = hx_ref[d]                     # [B, H]  old hidden at slot d
    c_d = cx_ref[d]                     # [B, H]  old cell   at slot d

    # Fused LSTMCell: a single MXU matmul over the concatenated [x, h_d].
    xh = jnp.concatenate([x, h_d], axis=1)                        # [B, I+H]
    z = jnp.dot(xh, w_ref[...], preferred_element_type=jnp.float32) + b_ref[...]

    i_g = jax.nn.sigmoid(z[:, 0 * H:1 * H])
    f_g = jax.nn.sigmoid(z[:, 1 * H:2 * H])
    g_g = jnp.tanh(z[:, 2 * H:3 * H])
    o_g = jax.nn.sigmoid(z[:, 3 * H:4 * H])
    c_new = f_g * c_d + i_g * g_g
    h_new = o_g * jnp.tanh(c_new)

    # Scatter the updated slot into the resident state; update the pool sum.
    hx_ref[d] = h_new
    cx_ref[d] = c_new
    new_sum = sum_ref[...] + (h_new - h_d)
    sum_ref[...] = new_sum

    # y = (h_new + sum of the other R-1 slots) / R == new_sum / R
    y_ref[0] = new_sum * (1.0 / R)


@functools.partial(jax.jit, static_argnames=("radius", "hidden_size"))
def dilated_lstm_sequence(states, hx, cx, wih, whh, b_ih, b_hh, dilation_start,
                          *, radius, hidden_size):
    """Run T consecutive DilatedLSTM.forward() calls in one Pallas kernel.

    states : [T, B, I]                   inputs for steps 0..T-1
    hx, cx : [B, radius*hidden_size]     PyTorch flat recurrent state
    wih    : [4H, I]; whh : [4H, H]      nn.LSTMCell weights (gate order i,f,g,o)
    b_ih, b_hh : [4H]
    dilation_start : runtime int scalar  module's dilation counter before step 0

    Returns (ys [T, B, H], (hx_new, cx_new), dilation_end).
    """
    T, B, I = states.shape
    R, H = radius, hidden_size

    # One-time layout glue: flat [B, R*H] (flat = h*R + d)  ->  slot-major [R, B, H].
    hx3 = hx.reshape(B, H, R).transpose(2, 0, 1)
    cx3 = cx.reshape(B, H, R).transpose(2, 0, 1)

    # Fuse the two LSTM matmuls: stack [W_ih^T ; W_hh^T] -> [I+H, 4H], one bias row.
    # (For large H on v6e/v7x, cast w/xh to bf16 with f32 accumulation; kept f32
    #  here since H is tiny and v5e has no bf16 VPU path.)
    w = jnp.concatenate([wih.T, whh.T], axis=0).astype(jnp.float32)
    bias = (b_ih + b_hh).reshape(1, 4 * H).astype(jnp.float32)

    # Per-step dilation slot: the module increments its counter every forward().
    dil0 = jnp.asarray(dilation_start, dtype=jnp.int32)
    dil_sched = jnp.mod(dil0 + jnp.arange(T, dtype=jnp.int32), R).astype(jnp.int32)

    grid_spec = pltpu.PrefetchScalarGridSpec(
        num_scalar_prefetch=1,
        grid=(T,),
        in_specs=[
            pl.BlockSpec((1, B, I), lambda t, dil: (t, 0, 0)),       # x_t
            pl.BlockSpec((R, B, H), lambda t, dil: (0, 0, 0)),       # hx0 (DMA'd once)
            pl.BlockSpec((R, B, H), lambda t, dil: (0, 0, 0)),       # cx0 (DMA'd once)
            pl.BlockSpec((I + H, 4 * H), lambda t, dil: (0, 0)),     # fused weights
            pl.BlockSpec((1, 4 * H), lambda t, dil: (0, 0)),         # bias
        ],
        out_specs=(
            pl.BlockSpec((1, B, H), lambda t, dil: (t, 0, 0)),       # y_t
            pl.BlockSpec((R, B, H), lambda t, dil: (0, 0, 0)),       # resident hx
            pl.BlockSpec((R, B, H), lambda t, dil: (0, 0, 0)),       # resident cx
        ),
        scratch_shapes=[pltpu.VMEM((B, H), jnp.float32)],            # running pool sum
    )

    ys, hx3_new, cx3_new = pl.pallas_call(
        dilated_lstm_seq_kernel,
        out_shape=(
            jax.ShapeDtypeStruct((T, B, H), jnp.float32),
            jax.ShapeDtypeStruct((R, B, H), jnp.float32),
            jax.ShapeDtypeStruct((R, B, H), jnp.float32),
        ),
        grid_spec=grid_spec,
        compiler_params=pltpu.CompilerParams(
            # Time is a true recurrence -> sequential.  (If B grows, add a
            # leading 'parallel' batch axis so v7x's two TensorCores split it.)
            dimension_semantics=("arbitrary",),
        ),
    )(dil_sched, states, hx3, cx3, w, bias)

    # One-time layout glue back to the PyTorch flat layout.
    hx_new = hx3_new.transpose(1, 2, 0).reshape(B, R * H)
    cx_new = cx3_new.transpose(1, 2, 0).reshape(B, R * H)
    dilation_end = jnp.mod(dil0 + T, R)
    return ys, (hx_new, cx_new), dilation_end


def _reference_sequence(states, hx, cx, wih, whh, b_ih, b_hh,
                        radius, hidden_size, dilation_start):
    """Pure NumPy mirror of DilatedLSTM.forward applied T consecutive times."""
    states = np.asarray(states, np.float64)
    hx = np.asarray(hx, np.float64).copy()
    cx = np.asarray(cx, np.float64).copy()
    wih = np.asarray(wih, np.float64)
    whh = np.asarray(whh, np.float64)
    b_ih = np.asarray(b_ih, np.float64)
    b_hh = np.asarray(b_hh, np.float64)
    T, B, _ = states.shape
    R, H = radius, hidden_size

    def sigmoid(v):
        return 1.0 / (1.0 + np.exp(-v))

    dilation = dilation_start
    ys = []
    for t in range(T):
        d_idx = dilation + np.arange(0, R * H, R)
        x = states[t]
        hxd, cxd = hx[:, d_idx], cx[:, d_idx]
        z = x @ wih.T + b_ih + hxd @ whh.T + b_hh
        i = sigmoid(z[:, :H])
        f = sigmoid(z[:, H:2 * H])
        g = np.tanh(z[:, 2 * H:3 * H])
        o = sigmoid(z[:, 3 * H:])
        c_new = f * cxd + i * g
        h_new = o * np.tanh(c_new)
        hx[:, d_idx] = h_new
        cx[:, d_idx] = c_new
        masked = np.setdiff1d(np.arange(R * H), d_idx)
        detached = hx[:, masked].reshape(B, H, R - 1).sum(-1)
        ys.append((hx[:, d_idx] + detached) / R)
        dilation = (dilation + 1) % R
    return np.stack(ys), hx, cx


if __name__ == "__main__":
    B, I, H, R, T = 2, 16, 32, 10, 8
    dilation_start = 3  # module's dilation counter before the first step

    key = jax.random.PRNGKey(0)
    k = jax.random.split(key, 7)
    bound = 1.0 / np.sqrt(H)  # PyTorch LSTMCell default init: U(-1/sqrt(H), 1/sqrt(H))
    wih = jax.random.uniform(k[0], (4 * H, I), jnp.float32, -bound, bound)
    whh = jax.random.uniform(k[1], (4 * H, H), jnp.float32, -bound, bound)
    b_ih = jax.random.uniform(k[2], (4 * H,), jnp.float32, -bound, bound)
    b_hh = jax.random.uniform(k[3], (4 * H,), jnp.float32, -bound, bound)

    states = jax.random.normal(k[4], (T, B, I), jnp.float32)
    hx = jax.random.normal(k[5], (B, R * H), jnp.float32)
    cx = jax.random.normal(k[6], (B, R * H), jnp.float32)

    ys, (hx_new, cx_new), dil_end = dilated_lstm_sequence(
        states, hx, cx, wih, whh, b_ih, b_hh, dilation_start,
        radius=R, hidden_size=H)
    jax.block_until_ready((ys, hx_new, cx_new, dil_end))

    ys_ref, hx_ref_np, cx_ref_np = _reference_sequence(
        states, hx, cx, wih, whh, b_ih, b_hh, R, H, dilation_start)

    np.testing.assert_allclose(np.asarray(ys), ys_ref, rtol=1e-4, atol=1e-4)
    np.testing.assert_allclose(np.asarray(hx_new), hx_ref_np, rtol=1e-4, atol=1e-4)
    np.testing.assert_allclose(np.asarray(cx_new), cx_ref_np, rtol=1e-4, atol=1e-4)
    assert int(dil_end) == (dilation_start + T) % R

    print("KERNEL_OK")
</pallas_src>

<mosaic_0001>
module attributes {stable_mosaic.version = 11 : i64} {
  func.func @dilated_lstm_seq_kernel(%arg0: i32, %arg1: memref<8xi32, #tpu.memory_space<smem>>, %arg2: memref<1x2x16xf32, #tpu.memory_space<vmem>>, %arg3: memref<10x2x32xf32, #tpu.memory_space<vmem>>, %arg4: memref<10x2x32xf32, #tpu.memory_space<vmem>>, %arg5: memref<48x128xf32, #tpu.memory_space<vmem>>, %arg6: memref<1x128xf32, #tpu.memory_space<vmem>>, %arg7: memref<1x2x32xf32, #tpu.memory_space<vmem>>, %arg8: memref<10x2x32xf32, #tpu.memory_space<vmem>>, %arg9: memref<10x2x32xf32, #tpu.memory_space<vmem>>, %arg10: memref<2x32xf32, #tpu.memory_space<vmem>>) attributes {dimension_semantics = [#tpu.dimension_semantics<arbitrary>], iteration_bounds = array<i64: 8>, scalar_prefetch = 1 : i64, scratch_operands = 1 : i64, tpu.core_type = #tpu.core_type<tc>, window_params = [{transform_indices = @transform_0, window_bounds = array<i64: 1, 2, 16>}, {pipeline_mode = #tpu.pipeline_mode<synchronous>, transform_indices = @transform_1, window_bounds = array<i64: 10, 2, 32>}, {pipeline_mode = #tpu.pipeline_mode<synchronous>, transform_indices = @transform_2, window_bounds = array<i64: 10, 2, 32>}, {pipeline_mode = #tpu.pipeline_mode<synchronous>, transform_indices = @transform_3, window_bounds = array<i64: 48, 128>}, {pipeline_mode = #tpu.pipeline_mode<synchronous>, transform_indices = @transform_4, window_bounds = array<i64: 1, 128>}, {transform_indices = @transform_5, window_bounds = array<i64: 1, 2, 32>}, {pipeline_mode = #tpu.pipeline_mode<synchronous>, transform_indices = @transform_6, window_bounds = array<i64: 10, 2, 32>}, {pipeline_mode = #tpu.pipeline_mode<synchronous>, transform_indices = @transform_7, window_bounds = array<i64: 10, 2, 32>}]} {
    %c0_i32 = arith.constant 0 : i32
    %0 = arith.cmpi eq, %arg0, %c0_i32 : i32
    %1 = arith.extui %0 : i1 to i32
    %c0_i32_0 = arith.constant 0 : i32
    %2 = arith.cmpi ne, %1, %c0_i32_0 : i32
    scf.if %2 {
      %c0_26 = arith.constant 0 : index
      %c0_27 = arith.constant 0 : index
      %c0_28 = arith.constant 0 : index
      %61 = vector.load %arg3[%c0_26, %c0_27, %c0_28] : memref<10x2x32xf32, #tpu.memory_space<vmem>>, vector<10x2x32xf32>
      %c0_29 = arith.constant 0 : index
      %c0_30 = arith.constant 0 : index
      %c0_31 = arith.constant 0 : index
      %62 = vector.load %arg8[%c0_29, %c0_30, %c0_31] : memref<10x2x32xf32, #tpu.memory_space<vmem>>, vector<10x2x32xf32>
      tpu.vector_store %arg8[%c0_29, %c0_30, %c0_31], %61 {strides = array<i32>} : memref<10x2x32xf32, #tpu.memory_space<vmem>>, vector<10x2x32xf32>,
      %c0_32 = arith.constant 0 : index
      %c0_33 = arith.constant 0 : index
      %c0_34 = arith.constant 0 : index
      %63 = vector.load %arg4[%c0_32, %c0_33, %c0_34] : memref<10x2x32xf32, #tpu.memory_space<vmem>>, vector<10x2x32xf32>
      %c0_35 = arith.constant 0 : index
      %c0_36 = arith.constant 0 : index
      %c0_37 = arith.constant 0 : index
      %64 = vector.load %arg9[%c0_35, %c0_36, %c0_37] : memref<10x2x32xf32, #tpu.memory_space<vmem>>, vector<10x2x32xf32>
      tpu.vector_store %arg9[%c0_35, %c0_36, %c0_37], %63 {strides = array<i32>} : memref<10x2x32xf32, #tpu.memory_space<vmem>>, vector<10x2x32xf32>,
      %c0_38 = arith.constant 0 : index
      %c0_39 = arith.constant 0 : index
      %c0_40 = arith.constant 0 : index
      %65 = vector.load %arg3[%c0_38, %c0_39, %c0_40] : memref<10x2x32xf32, #tpu.memory_space<vmem>>, vector<10x2x32xf32>
      %cst_41 = arith.constant dense<0.000000e+00> : vector<2x32xf32>
      %66 = vector.multi_reduction <add>, %65, %cst_41 [0] : vector<10x2x32xf32> to vector<2x32xf32>
      %c0_42 = arith.constant 0 : index
      %c0_43 = arith.constant 0 : index
      %67 = vector.load %arg10[%c0_42, %c0_43] : memref<2x32xf32, #tpu.memory_space<vmem>>, vector<2x32xf32>
      tpu.vector_store %arg10[%c0_42, %c0_43], %66 {strides = array<i32>} : memref<2x32xf32, #tpu.memory_space<vmem>>, vector<2x32xf32>,
    } else {
    }
    %3 = arith.index_cast %arg0 : i32 to index
    %4 = memref.load %arg1[%3] : memref<8xi32, #tpu.memory_space<smem>>
    %c0 = arith.constant 0 : index
    %c0_1 = arith.constant 0 : index
    %c0_2 = arith.constant 0 : index
    %5 = vector.load %arg2[%c0, %c0_1, %c0_2] : memref<1x2x16xf32, #tpu.memory_space<vmem>>, vector<1x2x16xf32>
    %6 = vector.shape_cast %5 : vector<1x2x16xf32> to vector<2x16xf32>
    %7 = arith.index_cast %4 : i32 to index
    %c0_3 = arith.constant 0 : index
    %c0_4 = arith.constant 0 : index
    %8 = vector.load %arg8[%7, %c0_3, %c0_4] : memref<10x2x32xf32, #tpu.memory_space<vmem>>, vector<1x2x32xf32>
    %9 = vector.shape_cast %8 : vector<1x2x32xf32> to vector<2x32xf32>
    %10 = arith.index_cast %4 : i32 to index
    %c0_5 = arith.constant 0 : index
    %c0_6 = arith.constant 0 : index
    %11 = vector.load %arg9[%10, %c0_5, %c0_6] : memref<10x2x32xf32, #tpu.memory_space<vmem>>, vector<1x2x32xf32>
    %12 = vector.shape_cast %11 : vector<1x2x32xf32> to vector<2x32xf32>
    %13 = tpu.concatenate %6, %9 in 1 : vector<2x16xf32>, vector<2x32xf32> -> vector<2x48xf32>
    %c0_7 = arith.constant 0 : index
    %c0_8 = arith.constant 0 : index
    %14 = vector.load %arg5[%c0_7, %c0_8] : memref<48x128xf32, #tpu.memory_space<vmem>>, vector<48x128xf32>
    %cst = arith.constant dense<0.000000e+00> : vector<2x128xf32>
    %15 = tpu.matmul %13, %14, %cst {dimension_numbers = #tpu.dot_dimension_numbers<[1], [0], [0], [1], [0, 0, 1, 1], [], []>} : vector<2x48xf32>, vector<48x128xf32>, vector<2x128xf32> -> vector<2x128xf32>
    %c0_9 = arith.constant 0 : index
    %c0_10 = arith.constant 0 : index
    %16 = vector.load %arg6[%c0_9, %c0_10] : memref<1x128xf32, #tpu.memory_space<vmem>>, vector<1x128xf32>
    %17 = vector.broadcast %16 : vector<1x128xf32> to vector<2x128xf32>
    %18 = arith.addf %15, %17 : vector<2x128xf32>
    %19 = vector.extract_strided_slice %18 {offsets = [0, 0], sizes = [2, 32], strides = [1, 1]} : vector<2x128xf32> to vector<2x32xf32>
    %20 = arith.negf %19 : vector<2x32xf32>
    %21 = math.exp %20 : vector<2x32xf32>
    %cst_11 = arith.constant 1.000000e+00 : f32
    %22 = vector.broadcast %cst_11 : f32 to vector<2x32xf32>
    %23 = arith.addf %22, %21 : vector<2x32xf32>
    %24 = arith.divf %22, %23 : vector<2x32xf32>
    %25 = vector.extract_strided_slice %18 {offsets = [0, 32], sizes = [2, 32], strides = [1, 1]} : vector<2x128xf32> to vector<2x32xf32>
    %26 = arith.negf %25 : vector<2x32xf32>
    %27 = math.exp %26 : vector<2x32xf32>
    %cst_12 = arith.constant 1.000000e+00 : f32
    %28 = vector.broadcast %cst_12 : f32 to vector<2x32xf32>
    %29 = arith.addf %28, %27 : vector<2x32xf32>
    %30 = arith.divf %28, %29 : vector<2x32xf32>
    %31 = vector.extract_strided_slice %18 {offsets = [0, 64], sizes = [2, 32], strides = [1, 1]} : vector<2x128xf32> to vector<2x32xf32>
    %32 = math.tanh %31 : vector<2x32xf32>
    %33 = vector.extract_strided_slice %18 {offsets = [0, 96], sizes = [2, 32], strides = [1, 1]} : vector<2x128xf32> to vector<2x32xf32>
    %34 = arith.negf %33 : vector<2x32xf32>
    %35 = math.exp %34 : vector<2x32xf32>
    %cst_13 = arith.constant 1.000000e+00 : f32
    %36 = vector.broadcast %cst_13 : f32 to vector<2x32xf32>
    %37 = arith.addf %36, %35 : vector<2x32xf32>
    %38 = arith.divf %36, %37 : vector<2x32xf32>
    %39 = arith.mulf %30, %12 : vector<2x32xf32>
    %40 = arith.mulf %24, %32 : vector<2x32xf32>
    %41 = arith.addf %39, %40 : vector<2x32xf32>
    %42 = math.tanh %41 : vector<2x32xf32>
    %43 = arith.mulf %38, %42 : vector<2x32xf32>
    %44 = arith.index_cast %4 : i32 to index
    %c0_14 = arith.constant 0 : index
    %c0_15 = arith.constant 0 : index
    %45 = vector.load %arg8[%44, %c0_14, %c0_15] : memref<10x2x32xf32, #tpu.memory_space<vmem>>, vector<1x2x32xf32>
    %46 = vector.shape_cast %45 : vector<1x2x32xf32> to vector<2x32xf32>
    %47 = vector.shape_cast %43 : vector<2x32xf32> to vector<1x2x32xf32>
    tpu.vector_store %arg8[%44, %c0_14, %c0_15], %47 {strides = array<i32>} : memref<10x2x32xf32, #tpu.memory_space<vmem>>, vector<1x2x32xf32>,
    %48 = arith.index_cast %4 : i32 to index
    %c0_16 = arith.constant 0 : index
    %c0_17 = arith.constant 0 : index
    %49 = vector.load %arg9[%48, %c0_16, %c0_17] : memref<10x2x32xf32, #tpu.memory_space<vmem>>, vector<1x2x32xf32>
    %50 = vector.shape_cast %49 : vector<1x2x32xf32> to vector<2x32xf32>
    %51 = vector.shape_cast %41 : vector<2x32xf32> to vector<1x2x32xf32>
    tpu.vector_store %arg9[%48, %c0_16, %c0_17], %51 {strides = array<i32>} : memref<10x2x32xf32, #tpu.memory_space<vmem>>, vector<1x2x32xf32>,
    %c0_18 = arith.constant 0 : index
    %c0_19 = arith.constant 0 : index
    %52 = vector.load %arg10[%c0_18, %c0_19] : memref<2x32xf32, #tpu.memory_space<vmem>>, vector<2x32xf32>
    %53 = arith.subf %43, %9 : vector<2x32xf32>
    %54 = arith.addf %52, %53 : vector<2x32xf32>
    %c0_20 = arith.constant 0 : index
    %c0_21 = arith.constant 0 : index
    %55 = vector.load %arg10[%c0_20, %c0_21] : memref<2x32xf32, #tpu.memory_space<vmem>>, vector<2x32xf32>
    tpu.vector_store %arg10[%c0_20, %c0_21], %54 {strides = array<i32>} : memref<2x32xf32, #tpu.memory_space<vmem>>, vector<2x32xf32>,
    %cst_22 = arith.constant 1.000000e-01 : f32
    %56 = vector.broadcast %cst_22 : f32 to vector<2x32xf32>
    %57 = arith.mulf %54, %56 : vector<2x32xf32>
    %c0_23 = arith.constant 0 : index
    %c0_24 = arith.constant 0 : index
    %c0_25 = arith.constant 0 : index
    %58 = vector.load %arg7[%c0_23, %c0_24, %c0_25] : memref<1x2x32xf32, #tpu.memory_space<vmem>>, vector<1x2x32xf32>
    %59 = vector.shape_cast %58 : vector<1x2x32xf32> to vector<2x32xf32>
    %60 = vector.shape_cast %57 : vector<2x32xf32> to vector<1x2x32xf32>
    tpu.vector_store %arg7[%c0_23, %c0_24, %c0_25], %60 {strides = array<i32>} : memref<1x2x32xf32, #tpu.memory_space<vmem>>, vector<1x2x32xf32>,
    return
  }
  func.func @transform_0(%arg0: i32, %arg1: memref<8xi32, #tpu.memory_space<smem>>) -> (i32, i32, i32) {
    %c0_i32 = arith.constant 0 : i32
    %c0_i32_0 = arith.constant 0 : i32
    %c0_i32_1 = arith.constant 0 : i32
    return %arg0, %c0_i32, %c0_i32_0 : i32, i32, i32
  }
  func.func @transform_1(%arg0: i32, %arg1: memref<8xi32, #tpu.memory_space<smem>>) -> (i32, i32, i32) {
    %c0_i32 = arith.constant 0 : i32
    %c0_i32_0 = arith.constant 0 : i32
    %c0_i32_1 = arith.constant 0 : i32
    %c0_i32_2 = arith.constant 0 : i32
    return %c0_i32, %c0_i32_0, %c0_i32_1 : i32, i32, i32
  }
  func.func @transform_2(%arg0: i32, %arg1: memref<8xi32, #tpu.memory_space<smem>>) -> (i32, i32, i32) {
    %c0_i32 = arith.constant 0 : i32
    %c0_i32_0 = arith.constant 0 : i32
    %c0_i32_1 = arith.constant 0 : i32
    %c0_i32_2 = arith.constant 0 : i32
    return %c0_i32, %c0_i32_0, %c0_i32_1 : i32, i32, i32
  }
  func.func @transform_3(%arg0: i32, %arg1: memref<8xi32, #tpu.memory_space<smem>>) -> (i32, i32) {
    %c0_i32 = arith.constant 0 : i32
    %c0_i32_0 = arith.constant 0 : i32
    %c0_i32_1 = arith.constant 0 : i32
    return %c0_i32, %c0_i32_0 : i32, i32
  }
  func.func @transform_4(%arg0: i32, %arg1: memref<8xi32, #tpu.memory_space<smem>>) -> (i32, i32) {
    %c0_i32 = arith.constant 0 : i32
    %c0_i32_0 = arith.constant 0 : i32
    %c0_i32_1 = arith.constant 0 : i32
    return %c0_i32, %c0_i32_0 : i32, i32
  }
  func.func @transform_5(%arg0: i32, %arg1: memref<8xi32, #tpu.memory_space<smem>>) -> (i32, i32, i32) {
    %c0_i32 = arith.constant 0 : i32
    %c0_i32_0 = arith.constant 0 : i32
    %c0_i32_1 = arith.constant 0 : i32
    return %arg0, %c0_i32, %c0_i32_0 : i32, i32, i32
  }
  func.func @transform_6(%arg0: i32, %arg1: memref<8xi32, #tpu.memory_space<smem>>) -> (i32, i32, i32) {
    %c0_i32 = arith.constant 0 : i32
    %c0_i32_0 = arith.constant 0 : i32
    %c0_i32_1 = arith.constant 0 : i32
    %c0_i32_2 = arith.constant 0 : i32
    return %c0_i32, %c0_i32_0, %c0_i32_1 : i32, i32, i32
  }
  func.func @transform_7(%arg0: i32, %arg1: memref<8xi32, #tpu.memory_space<smem>>) -> (i32, i32, i32) {
    %c0_i32 = arith.constant 0 : i32
    %c0_i32_0 = arith.constant 0 : i32
    %c0_i32_1 = arith.constant 0 : i32
    %c0_i32_2 = arith.constant 0 : i32
    return %c0_i32, %c0_i32_0, %c0_i32_1 : i32, i32, i32
  }
}

</mosaic_0001>

<bundles_post_ra>
// kernel: dilated_lstm_sequence.1
= control target key start
LH: loop header
LB: loop body
LE: loop exit
PB: predicated region body
PF: predicated region fallthrough
CT: control target
= control target key end

     0   :  { %s701_s30 = smov [#allocation4]   ;;  %s1079_s0 = inlined_call_operand.vmem [shape: s32[8], index: 0, kind: input, shape index: {}]   ;;  %s1080_s1 = inlined_call_operand.vmem [shape: f32[8,2,16], index: 1, kind: input, shape index: {}]   ;;  %s1081_s2 = inlined_call_operand.vmem [shape: f32[10,2,32], index: 2, kind: input, shape index: {}]   ;;  %s1082_s3 = inlined_call_operand.vmem [shape: f32[10,2,32], index: 3, kind: input, shape index: {}]   ;;  %s1083_s4 = inlined_call_operand.vmem [shape: f32[48,128], index: 4, kind: input, shape index: {}]   ;;  %s1084_s5 = inlined_call_operand.vmem [shape: f32[1,128], index: 5, kind: input, shape index: {}]   ;;  %s1085_s6 = inlined_call_operand.hbm [shape: f32[8,2,32], index: 6, kind: output, shape index: {0}]   ;;  %s1086_s7 = inlined_call_operand.vmem [shape: f32[10,2,32], index: 7, kind: output, shape index: {1}]   ;;  %s1087_s8 = inlined_call_operand.vmem [shape: f32[10,2,32], index: 8, kind: output, shape index: {2}]  }
   0x1   :  { %s15_s29 = sshll.u32 %s1079_s0, 4  ;;  %s16_s29 = int_to_ptr.vmem [resolvable:$true] %s15_s29 }
   0x2   :  { %18 = dma.vmem_to_smem %s16_s29, 16, %s701_s30, [#allocation3] }
   0x3   :  { %679 = dma.done.wait [#allocation3], 16 }
   0x4   :  { %680 = vsyncadd [#allocation3], 4294967280 }
   0x5   :  { %21 = sfence }
   0x6   :  { %22 = vsyncpa [#allocation6], 0 }
   0x7   :  { %24 = vsyncpa [#allocation6 + $0x1], 0  ;;  %s754_s9 = smov 0   ;;  %s756_s10 = smov 0  }
   0x8   :  { %s758_s11 = smov 0   ;;  %s760_s12 = smov 0  }
   0x9 LB: > { %s775_s0 = sadd.s32 4294967295, %s699_s12   ;;  %s556_s13 = sadd.s32 4294967294, %s699_s12   ;;  %s699_s12 = sphi %s760_s12, %s1097_s12   ;;  %s695_s11 = sphi %s758_s11, %s1096_s11   ;;  %s691_s10 = sphi %s756_s10, %s1095_s10   ;;  %s687_s9 = sphi %s754_s9, %s1094_s9  }
   0xa   : > { %s779_s14 = sadd.s32 1, %s699_s12   ;;  %s147_s15 = sadd.s32 1, %s695_s11 }
   0xb   : > { %s144_s16 = ssub.s32 %s699_s12, %s779_s14  ;;  %p157_p0 = scmp.ne.s32.totalorder %s695_s11, %s691_s10 }
   0xc   : > { %p145_p1 = scmp.eq.s32.totalorder %s144_s16, 0  ;;  %p158_p2 = scmp.eq.s32.totalorder %s775_s0, 7 }
   0xd   : > { %p163_p3 = scmp.ne.s32.totalorder %s691_s10, %s687_s9  ;;  %p164_p4 = scmp.eq.s32.totalorder %s556_s13, 7 }
   0xe   : > { %s790_s17 = scalar_select %p145_p1, %s695_s11, %s147_s15  }
   0xf   : > { %p792_p5 = por %p158_p2, %p157_p0  ;;  %p796_p6 = por %p164_p4, %p163_p3 }
  0x10   : > { %p559_p7 = scmp.ge.s32.totalorder %s699_s12, 1  ;;  %p243_p8 = scmp.lt.s32.totalorder %s699_s12, 9 }
  0x12   : > { %p244_p9 = pnand %p559_p7, %p243_p8 }
  0x13   : > { %s1088_s20 = sand.u32 (!%p244_p9), 1, %s691_s10   ;;  %p274_p10 = scmp.lt.s32.totalorder (!%p244_p9), %s775_s0, 7 }
  0x14   : > { %247 = sbr.rel (%p244_p9) target bundleno = 786 (0x312), region = 40  ;;  %s806_s21 = sshll.u32 (!%p244_p9), %s1088_s20, 1 }
  0x15   : > { %p562_p11 = scmp.ne.s32.totalorder (!%p244_p9), %s775_s0, 0 }
  0x19   : > { %s275_s22 = scalar_select %p274_p10, %s775_s0, 7 }
  0x1a   : > { %281 = sbr.rel (%p562_p11) target bundleno = 62 (0x3e), region = 44 }
  0x1b   : > { %s561_s23 = sshll.u32 %s275_s22, 1 }
  0x1c   : > { %s812_s26 = scalar_lea.vmem %s1080_s1, %s561_s23 }
  0x1f   : > { %v282_v0 = vld [vmem:[%s1081_s2] sm:$0x3]  ;;  %vm292_vm0 = vcmask 254976   ;;  %v283_v1 = vld [vmem:[%s1081_s2 + $0x2] sm:$0x3] }
  0x20   : > { %293 = vst.msk [vmem:[%s1086_s7] sm:$0x3] %vm292_vm0, %v282_v0  ;;  %v284_v2 = vld [vmem:[%s1081_s2 + $0x4] sm:$0x3]  ;;  %v285_v3 = vld [vmem:[%s1081_s2 + $0x6] sm:$0x3] }
  0x21   : > { %294 = vst.msk [vmem:[%s1086_s7 + $0x2] sm:$0x3] %vm292_vm0, %v283_v1  ;;  %v286_v4 = vld [vmem:[%s1081_s2 + $0x8] sm:$0x3]  ;;  %v287_v5 = vld [vmem:[%s1081_s2 + $0xa] sm:$0x3] }
  0x22   : > { %295 = vst.msk [vmem:[%s1086_s7 + $0x4] sm:$0x3] %vm292_vm0, %v284_v2  ;;  %v288_v6 = vld [vmem:[%s1081_s2 + $0xc] sm:$0x3]  ;;  %v289_v7 = vld [vmem:[%s1081_s2 + $0xe] sm:$0x3] }
  0x23   : > { %296 = vst.msk [vmem:[%s1086_s7 + $0x6] sm:$0x3] %vm292_vm0, %v285_v3  ;;  %v290_v8 = vld [vmem:[%s1081_s2 + $0x10] sm:$0x3]  ;;  %v291_v9 = vld [vmem:[%s1081_s2 + $0x12] sm:$0x3] }
  0x24   : > { %297 = vst.msk [vmem:[%s1086_s7 + $0x8] sm:$0x3] %vm292_vm0, %v286_v4  ;;  %v303_v10 = vld [vmem:[%s1082_s3] sm:$0x3]  ;;  %v304_v11 = vld [vmem:[%s1082_s3 + $0x2] sm:$0x3] }
  0x25   : > { %298 = vst.msk [vmem:[%s1086_s7 + $0xa] sm:$0x3] %vm292_vm0, %v287_v5  ;;  %v305_v12 = vld [vmem:[%s1082_s3 + $0x4] sm:$0x3]  ;;  %v306_v13 = vld [vmem:[%s1082_s3 + $0x6] sm:$0x3] }
  0x26   : > { %299 = vst.msk [vmem:[%s1086_s7 + $0xc] sm:$0x3] %vm292_vm0, %v288_v6  ;;  %v307_v14 = vld [vmem:[%s1082_s3 + $0x8] sm:$0x3]  ;;  %v323_v15 = vld [vmem:[%s1081_s2] sm:$0x3] }
  0x27   : > { %300 = vst.msk [vmem:[%s1086_s7 + $0xe] sm:$0x3] %vm292_vm0, %v289_v7  ;;  %v324_v16 = vld [vmem:[%s1081_s2 + $0x2] sm:$0x3]  ;;  %v325_v17 = vld [vmem:[%s1081_s2 + $0x4] sm:$0x3] }
  0x28   : > { %301 = vst.msk [vmem:[%s1086_s7 + $0x10] sm:$0x3] %vm292_vm0, %v290_v8  ;;  %v308_v18 = vld [vmem:[%s1082_s3 + $0xa] sm:$0x3]  ;;  %v309_v19 = vld [vmem:[%s1082_s3 + $0xc] sm:$0x3] }
  0x29   : > { %302 = vst.msk [vmem:[%s1086_s7 + $0x12] sm:$0x3] %vm292_vm0, %v291_v9  ;;  %v310_v20 = vld [vmem:[%s1082_s3 + $0xe] sm:$0x3]  ;;  %v326_v21 = vld [vmem:[%s1081_s2 + $0x6] sm:$0x3] }
  0x2a   : > { %313 = vst.msk [vmem:[%s1087_s8] sm:$0x3] %vm292_vm0, %v303_v10  ;;  %v333_v22 = vsel %vm292_vm0, %v323_v15, 0.0  ;;  %v334_v23 = vsel %vm292_vm0, %v324_v16, 0.0  ;;  %v336_v24 = vsel %vm292_vm0, %v325_v17, 0.0  ;;  %v338_v29 = vsel %vm292_vm0, %v326_v21, 0.0 }
  0x2b   : > { %314 = vst.msk [vmem:[%s1087_s8 + $0x2] sm:$0x3] %vm292_vm0, %v304_v11  ;;  %v311_v25 = vld [vmem:[%s1082_s3 + $0x10] sm:$0x3]  ;;  %v327_v26 = vld [vmem:[%s1081_s2 + $0x8] sm:$0x3]  ;;  %v335_v27 = vadd.f32 %v334_v23, %v333_v22 }
  0x2c   : > { %315 = vst.msk [vmem:[%s1087_s8 + $0x4] sm:$0x3] %vm292_vm0, %v305_v12  ;;  %v312_v28 = vld [vmem:[%s1082_s3 + $0x12] sm:$0x3]  ;;  %v328_v30 = vld [vmem:[%s1081_s2 + $0xa] sm:$0x3] }
  0x2d   : > { %316 = vst.msk [vmem:[%s1087_s8 + $0x6] sm:$0x3] %vm292_vm0, %v306_v13  ;;  %v337_v31 = vadd.f32 %v336_v24, %v335_v27  ;;  %v340_v32 = vsel %vm292_vm0, %v327_v26, 0.0  ;;  %v329_v33 = vld [vmem:[%s1081_s2 + $0xc] sm:$0x3]  ;;  %v342_v35 = vsel %vm292_vm0, %v328_v30, 0.0 }
  0x2e   : > { %317 = vst.msk [vmem:[%s1087_s8 + $0x8] sm:$0x3] %vm292_vm0, %v307_v14  ;;  %v330_v36 = vld [vmem:[%s1081_s2 + $0xe] sm:$0x3]  ;;  %v344_v38 = vsel %vm292_vm0, %v329_v33, 0.0 }
  0x2f   : > { %318 = vst.msk [vmem:[%s1087_s8 + $0xa] sm:$0x3] %vm292_vm0, %v308_v18  ;;  %v339_v34 = vadd.f32 %v338_v29, %v337_v31  ;;  %v331_v39 = vld [vmem:[%s1081_s2 + $0x10] sm:$0x3]  ;;  %v346_v41 = vsel %vm292_vm0, %v330_v36, 0.0 }
  0x30   : > { %319 = vst.msk [vmem:[%s1087_s8 + $0xc] sm:$0x3] %vm292_vm0, %v309_v19  ;;  %v332_v42 = vld [vmem:[%s1081_s2 + $0x12] sm:$0x3]  ;;  %v348_v44 = vsel %vm292_vm0, %v331_v39, 0.0 }
  0x31   : > { %320 = vst.msk [vmem:[%s1087_s8 + $0xe] sm:$0x3] %vm292_vm0, %v310_v20  ;;  %v341_v37 = vadd.f32 %v340_v32, %v339_v34  ;;  %v350_v46 = vsel %vm292_vm0, %v332_v42, 0.0 }
  0x32   : > { %321 = vst.msk [vmem:[%s1087_s8 + $0x10] sm:$0x3] %vm292_vm0, %v311_v25 }
  0x33   : > { %322 = vst.msk [vmem:[%s1087_s8 + $0x12] sm:$0x3] %vm292_vm0, %v312_v28  ;;  %v343_v40 = vadd.f32 %v342_v35, %v341_v37 }
  0x35   : > { %v345_v43 = vadd.f32 %v344_v38, %v343_v40 }
  0x37   : > { %v347_v45 = vadd.f32 %v346_v41, %v345_v43 }
  0x39   : > { %v349_v47 = vadd.f32 %v348_v44, %v347_v45 }
  0x3b   : > { %v351_v48 = vadd.f32 %v350_v46, %v349_v47 }
  0x3d   : > { %352 = vst.msk [vmem:[#allocation2] sm:$0x3] %vm292_vm0, %v351_v48 }
  0x3e PF: > { %s353_s16 = sld [smem:[#allocation4 + %s775_s0]]  ;;  %v371_v49 = vld [vmem:[%s1083_s4 + $0x28] sm:$0xff]  ;;  %v370_v50 = vld [vmem:[%s1083_s4 + $0x20] sm:$0xff]  ;;  %v369_v51 = vld [vmem:[%s1083_s4 + $0x18] sm:$0xff]  ;;  %s702_s28 = smov 16   ;;  %vm364_vm1 = vcmask 130048  }
  0x3f   : > { %390 = vmatpush.msra.mxu0 %v371_v49  ;;  %v368_v52 = vld [vmem:[%s1083_s4 + $0x10] sm:$0xff]  ;;  %v367_v53 = vld [vmem:[%s1083_s4 + $0x8] sm:$0xff]  ;;  %v366_v55 = vld [vmem:[%s1083_s4] sm:$0xff]  ;;  %s703_s15 = smov 32   ;;  %vm376_vm2 = vcmask 392192   ;;  %s704_s27 = smov 64  }
  0x40   : > { %v354_v57 = vld [vmem:[%s812_s26] sm:$0x3]  ;;  %s705_s26 = smov 96   ;;  %vm445_vm7 = vcmask 254976   ;;  %s1091_s29 = scalar_lea.vmem [#allocation5], %s806_s21 }
  0x41   : > { %391 = vmatpush.msra.mxu0 %v370_v50  ;;  %v614_v60 = vld [vmem:[%s1084_s5] ss:$0 sm:$0xff] }
  0x43   : > { %392 = vmatpush.msra.mxu0 %v369_v51 }
  0x44   : > { %s563_s13 = sshll.u32 %s353_s16, 1  ;;  %v452_v26 = vld [vmem:[#allocation2] sm:$0x3]  ;;  %s478_s16 = sshll.u32 %s1091_s29, 4  ;;  %s479_s16 = int_to_ptr.vmem [resolvable:$true] %s478_s16 }
  0x45   : > { %s1016_s25 = scalar_lea.vmem %s1086_s7, %s563_s13  ;;  %393 = vmatpush.msra.mxu0 %v368_v52  ;;  %s1022_s30 = scalar_lea.vmem %s1087_s8, %s563_s13 }
  0x46   : > { %v357_v54 = vld [vmem:[%s1016_s25] sm:$0x3]  ;;  %s567_s13 = sshll.u32 %s775_s0, 1  ;;  %s1093_s0 = sand.u32 1, %s691_s10  }
  0x47   : > { %361 = vrot.lane.b32.xlu0 %v357_v54, %s702_s28  ;;  %394 = vmatpush.msra.mxu0 %v367_v53  ;;  %v359_v56 = vld [vmem:[%s1022_s30] sm:$0x3]  ;;  %s476_s20 = scalar_lea.hbm %s1085_s6, %s567_s13  ;;  %s655_s13 = scalar_lea.hbm %s1085_s6, 16 }
  0x48   : > { %421 = vrot.lane.b32.xlu1 %v359_v56, %s703_s15 }
  0x49   : > { %395 = vmatpush.msra.mxu0 %v366_v55 }
  0xb9   : > { %v362_v58 = vpop.permute.xlu0 %361 }
  0xba   : > { %v365_v59 = vsel %vm364_vm1, %v354_v57, %v362_v58  ;;  %v422_v15 = vpop.permute.xlu1 %421 }
  0xbb   : > { %564 = vmatmul.msk.f32.vlgmr.msra.gmra.mxu0 %vm376_vm2, %v365_v59 }
 0x138   : > { %v397_v61 = vpop.f32.mrf.mxu0 }
 0x139   : > { %v398_v62 = vadd.f32 %v614_v60, %v397_v61 }
 0x13b   : > { %615 = vtanh.f32 %v398_v62  ;;  %v565_v0 = vmul.f32 -1.442695, %v398_v62 }
 0x13d   : > { %617 = vpow2.f32 %v565_v0 }
 0x141   : > { %v616_v63 = vpop.eup %615 }
 0x142   : > { %426 = vrot.lane.b32.xlu0 %v616_v63, %s704_s27 }
 0x143   : > { %v618_v1 = vpop.eup %617 }
 0x144   : > { %v403_v2 = vadd.f32 1.0, %v618_v1 }
 0x146   : > { %619 = vrcp.f32 %v403_v2  ;;  %v415_v8 = vand.u32 2147483648, %v403_v2  ;;  %vm409_vm4 = vweird.f32 %v403_v2  ;;  %v413_v9 = vand.u32 2147483647, %v403_v2 }
 0x148   : > { %v416_v11 = vor.u32 1.1754944e-38, %v415_v8  ;;  %vm414_vm6 = vcmp.eq.f32.partialorder %v413_v9, 8.507059e+37 }
 0x14c   : > { %v620_v3 = vpop.eup %619 }
 0x14d   : > { %v405_v4 = vmul.f32 %v620_v3, %v403_v2  ;;  %vm410_vm3 = vweird.f32 %v620_v3 }
 0x14e   : > { %vm411_vm5 = vmor %vm409_vm4, %vm410_vm3 }
 0x14f   : > { %v406_v5 = vsub.f32 1.0, %v405_v4 }
 0x151   : > { %v407_v6 = vmul.f32 %v620_v3, %v406_v5 }
 0x153   : > { %v408_v7 = vadd.f32 %v620_v3, %v407_v6 }
 0x155   : > { %v412_v10 = vsel %vm411_vm5, %v620_v3, %v408_v7 }
 0x156   : > { %v417_v12 = vsel %vm414_vm6, %v416_v11, %v412_v10 }
 0x157   : > { %v424_v16 = vmul.f32 %v422_v15, %v417_v12 }
 0x1b4   : > { %v427_v13 = vpop.permute.xlu0 %426 }
 0x1b5   : > { %v429_v14 = vmul.f32 %v427_v13, %v417_v12 }
 0x1b7   : > { %431 = vrot.lane.b32.xlu1 %v429_v14, %s703_s15 }
 0x229   : > { %v432_v17 = vpop.permute.xlu1 %431 }
 0x22a   : > { %v434_v18 = vadd.f32 %v432_v17, %v424_v16 }
 0x22c   : > { %621 = vtanh.f32 %v434_v18 }
 0x232   : > { %v622_v19 = vpop.eup %621 }
 0x233   : > { %437 = vrot.lane.b32.xlu2 %v622_v19, %s704_s27 }
 0x23b   : > { %453 = vrot.lane.b32.xlu2 %v357_v54, %s705_s26 }
 0x243   : > { %448 = vrot.lane.b32.xlu2 %v434_v18, %s705_s26 }
 0x28d   : > { %v438_v20 = vpop.permute.xlu2 %437 }
 0x28e   : > { %v440_v21 = vmul.f32 %v438_v20, %v417_v12 }
 0x290   : > { %442 = vrot.lane.b32.xlu1 %v440_v21, %s703_s15 }
 0x295   : > { %v454_v22 = vpop.permute.xlu2 %453 }
 0x296   : > { %v456_v23 = vsub.f32 %v440_v21, %v454_v22 }
 0x298   : > { %458 = vrot.lane.b32.xlu0 %v456_v23, %s703_s15  ;;  %s480_s15 = sshll.u32 %s476_s20, 4  ;;  %s481_s15 = int_to_ptr.hbm [resolvable:$true] %s480_s15 }
 0x299   : > { %s649_s22 = sshra.s32 %s481_s15, 4  ;;  %s650_s22 = int_to_ptr.hbm [resolvable:$true] %s649_s22 }
 0x29a   : > { %s651_s23 = scalar_lea.hbm %s650_s22, 2  ;;  %p656_p1 = scmp.lt.s32.totalorder %s650_s22, %s1085_s6 }
 0x29b   : > { %p652_p12 = scmp.ne.s32.totalorder %s650_s22, %s651_s23  ;;  %p657_p2 = scmp.lt.s32.totalorder %s655_s13, %s651_s23 }
 0x29d   : > { %v449_v24 = vpop.permute.xlu2 %448  ;;  %p653_p13 = pnand %p652_p12, %p792_p5  ;;  %p658_p3 = por %p657_p2, %p656_p1 }
 0x29e   : > { %451 = vst.msk [vmem:[%s1022_s30] sm:$0x3] %vm445_vm7, %v449_v24  ;;  %s1092_s30 = smov %s1091_s29 }
 0x29f   : > { %p654_p0 = pneg %p653_p13 }
 0x2a1   : > { %p659_p4 = pnand %p658_p3, %p654_p0 }
 0x302   : > { %v443_v25 = vpop.permute.xlu1 %442 }
 0x303   : > { %446 = vst.msk [vmem:[%s1016_s25] sm:$0x3] %vm445_vm7, %v443_v25  ;;  %s466_s25 = scalar_lea.sflag [#allocation6], %s1093_s0 }
 0x30a   : > { %v459_v27 = vpop.permute.xlu0 %458 }
 0x30b   : > { %v461_v28 = vadd.f32 %v459_v27, %v452_v26 }
 0x30d   : > { %462 = vst.msk [vmem:[#allocation2] sm:$0x3] %vm445_vm7, %v461_v28  ;;  %v463_v29 = vmul.f32 0.1, %v461_v28 }
 0x30f   : > { %464 = vst.msk [vmem:[%s1092_s30] sm:$0x3] %vm445_vm7, %v463_v29 }
 0x310   : > { %662 = shalt.err (!%p659_p4)
}
 0x311   : > { %570 = dma.vmem_to_hbm [thread:$0]  (%p792_p5), %s479_s16, 32, %s481_s15, %s466_s25  }
 0x312 PF: > { %p576_p7 = scmp.ge.s32.totalorder %s699_s12, 2  ;;  %s504_s21 = sand.u32 1, %s687_s9  }
 0x313   : > { %s505_s20 = scalar_lea.sflag [#allocation6], %s504_s21 }
 0x314   : > { %p573_p8 = pnand %p576_p7, %p796_p6 }
 0x316   : > { %p574_p9 = pneg %p573_p8 }
 0x318   : > { %682 = dma.done.wait (%p574_p9), %s505_s20, 32  }
 0x319   : > { %684 = vsyncadd (%p574_p9), %s505_s20, 4294967264  ;;  %p27_p10 = scmp.ge.s32.totalorder %s779_s14, 10   ;;  %s1094_s9 = smov %s691_s10 }
 0x31a   : > { %s1095_s10 = smov %s695_s11  ;;  %s1096_s11 = smov %s790_s17 }
 0x31b   : > { %s1097_s12 = smov %s779_s14  ;;  %29 = sbr.rel (!%p27_p10) target bundleno = 9 (0x9), region = 97 }
 0x320   :  { %511 = vsyncpa [#allocation6], 1 }
 0x321   :  { %513 = vsyncpa [#allocation6 + $0x1], 1 }

</bundles_post_ra>
